<compile_context>
chip_gen: v7x
topology: tpu7x:2x2x1
jax: 0.10.0
libtpu: 0.0.40
codegen_flags: <defaults>
</compile_context>

<pallas_src>
import jax
import jax.numpy as jnp
from jax.experimental import pallas as pl
from jax.experimental.pallas import tpu as pltpu


def _identity_kernel(x_ref, o_ref):
    # Elementwise copy of the current VMEM tile.
    o_ref[...] = x_ref[...]


# Sublane packing per element size (packed dtypes fill 16/32 sublanes per vreg).
_SUBLANE_PACK = {4: 8, 2: 16, 1: 32}

_LANE = 128
_MAX_LANES = 8192
_BLOCK_BUDGET_BYTES = 4 * 1024 * 1024   # per block, per direction
_VMEM_LIMIT_BYTES = 48 * 1024 * 1024    # > v5e's 16 MiB scoped default,
                                        # < v7x's 64 MiB physical VMEM


def _pick_lane_width(total, sub, max_lanes=_MAX_LANES):
    """Largest multiple-of-128 lane width dividing `total` (<= max_lanes),
    preferring widths whose row count is a multiple of the sublane pack."""
    best_any = None
    best_packed = None
    c = _LANE
    while c <= min(total, max_lanes):
        if total % c == 0:
            best_any = c
            if (total // c) % sub == 0:
                best_packed = c
        c += _LANE
    return best_packed if best_packed is not None else best_any


def _choose_row_tile(R, C, itemsize, sub, nbytes):
    """Row-tile: big enough to amortize the ~0.35us/step overhead, small
    enough to (a) stay within the per-block VMEM budget and (b) give the
    pipeline >= 4-8 grid steps on large arrays so HBM read and write DMAs
    proceed concurrently (and both v7x TensorCores get >= 2 blocks each)."""
    bytes_per_row = C * itemsize
    max_rows_budget = max(_BLOCK_BUDGET_BYTES // bytes_per_row, 1)

    if nbytes >= (8 << 20):
        target_steps = 8      # >= 4 blocks per TC on v7x
    elif nbytes >= (1 << 20):
        target_steps = 4
    else:
        target_steps = 1      # tiny arrays: don't pay extra step overhead

    rows_for_steps = pl.cdiv(R, target_steps)
    tr = min(R, max_rows_budget, rows_for_steps)

    if tr < R:
        # Partial tiles must keep the sublane dim a multiple of the pack.
        tr = max((tr // sub) * sub, sub)
    return tr


def identity(x):
    """Module-equivalent forward: nn.Identity has no compute, so the optimal
    'kernel' is no kernel at all (zero HBM traffic). Note: `y is x` only holds
    outside jit; under jit/donation it is value-identical, not object-identical."""
    return x


def identity_pallas(x):
    """Identity as an explicit Pallas copy kernel (lane-dense, pipelined)."""
    orig_shape = x.shape
    dtype = x.dtype
    total = x.size
    if total == 0:
        return x

    itemsize = jnp.dtype(dtype).itemsize
    sub = _SUBLANE_PACK.get(itemsize, 8)

    lanes = _pick_lane_width(total, sub)
    pad = 0
    if lanes is None:
        # Pad-to-128 fallback: flatten, pad to a multiple of 128*sub so every
        # store is a full-width unmasked `vst`, slice the tail off afterwards.
        flat = x.reshape(-1)
        chunk = _LANE * sub
        padded_total = ((total + chunk - 1) // chunk) * chunk
        pad = padded_total - total
        flat = jnp.pad(flat, (0, pad))
        lanes = _pick_lane_width(padded_total, sub)
        x2 = flat.reshape(padded_total // lanes, lanes)
    else:
        # Lane-dense layout: unmasked, full-width vector stores.
        x2 = x.reshape(total // lanes, lanes)

    R, C = x2.shape
    tr = _choose_row_tile(R, C, itemsize, sub, x2.nbytes)
    grid = (pl.cdiv(R, tr),)

    out2 = pl.pallas_call(
        _identity_kernel,
        out_shape=jax.ShapeDtypeStruct((R, C), dtype),
        grid_spec=pltpu.PrefetchScalarGridSpec(
            num_scalar_prefetch=0,
            grid=grid,
            in_specs=[pl.BlockSpec((tr, C), lambda i: (i, 0))],
            out_specs=pl.BlockSpec((tr, C), lambda i: (i, 0)),
        ),
        compiler_params=pltpu.CompilerParams(
            dimension_semantics=("parallel",),
            vmem_limit_bytes=_VMEM_LIMIT_BYTES,
        ),
        cost_estimate=pl.CostEstimate(
            flops=0, transcendentals=0, bytes_accessed=2 * x2.nbytes
        ),
    )(x2)

    out_flat = out2.reshape(-1)
    if pad:
        out_flat = out_flat[:total]
    return out_flat.reshape(orig_shape)


if __name__ == "__main__":
    key = jax.random.PRNGKey(0)
    x = jax.random.normal(key, (2, 4, 16, 16), dtype=jnp.float32)

    # Module-equivalent fast path: no copy at all (object-identity only
    # guaranteed outside jit).
    y_fast = identity(x)
    assert y_fast is x

    # Pallas copy kernel (lane-dense: 2048 elems -> (8, 256) tile, grid=1).
    y = identity_pallas(x)
    jax.block_until_ready(y)
    assert y.shape == x.shape, f"shape mismatch: {y.shape} vs {x.shape}"
    assert y.dtype == x.dtype, f"dtype mismatch: {y.dtype} vs {x.dtype}"
    assert bool(jnp.array_equal(y, x)), "identity output differs from input"

    # Packed dtype + multi-step pipelined grid path (1 MiB -> 4 grid steps).
    xb = jax.random.normal(key, (4, 8, 128, 128), dtype=jnp.float32).astype(
        jnp.bfloat16
    )
    yb = identity_pallas(xb)
    jax.block_until_ready(yb)
    assert yb.shape == xb.shape and yb.dtype == xb.dtype
    assert bool(jnp.array_equal(yb, xb)), "bf16 identity output differs"

    # Non-128-divisible element count -> pad-to-128 fallback + slice.
    xo = jax.random.normal(key, (3, 5, 7), dtype=jnp.float32)
    yo = identity_pallas(xo)
    jax.block_until_ready(yo)
    assert yo.shape == xo.shape and yo.dtype == xo.dtype
    assert bool(jnp.array_equal(yo, xo)), "padded-path identity output differs"

    print("KERNEL_OK")
</pallas_src>

<mosaic_0001>
module attributes {stable_mosaic.version = 11 : i64} {
  func.func @_identity_kernel(%arg0: i32, %arg1: memref<8x256xf32, #tpu.memory_space<vmem>>, %arg2: memref<8x256xf32, #tpu.memory_space<vmem>>) attributes {dimension_semantics = [#tpu.dimension_semantics<parallel>], iteration_bounds = array<i64: 1>, scalar_prefetch = 0 : i64, scratch_operands = 0 : i64, tpu.core_type = #tpu.core_type<tc>, window_params = [{transform_indices = @transform_0, window_bounds = array<i64: 8, 256>}, {transform_indices = @transform_1, window_bounds = array<i64: 8, 256>}]} {
    %c0 = arith.constant 0 : index
    %c0_0 = arith.constant 0 : index
    %0 = vector.load %arg1[%c0, %c0_0] : memref<8x256xf32, #tpu.memory_space<vmem>>, vector<8x256xf32>
    %c0_1 = arith.constant 0 : index
    %c0_2 = arith.constant 0 : index
    %1 = vector.load %arg2[%c0_1, %c0_2] : memref<8x256xf32, #tpu.memory_space<vmem>>, vector<8x256xf32>
    tpu.vector_store %arg2[%c0_1, %c0_2], %0 {strides = array<i32>} : memref<8x256xf32, #tpu.memory_space<vmem>>, vector<8x256xf32>,
    return
  }
  func.func @transform_0(%arg0: i32) -> (i32, i32) {
    %c0_i32 = arith.constant 0 : i32
    %c0_i32_0 = arith.constant 0 : i32
    return %arg0, %c0_i32 : i32, i32
  }
  func.func @transform_1(%arg0: i32) -> (i32, i32) {
    %c0_i32 = arith.constant 0 : i32
    %c0_i32_0 = arith.constant 0 : i32
    return %arg0, %c0_i32 : i32, i32
  }
}

</mosaic_0001>

<bundles_post_ra>
// kernel: tpu_custom_call.1
= control target key start
LH: loop header
LB: loop body
LE: loop exit
PB: predicated region body
PF: predicated region fallthrough
CT: control target
= control target key end

     0   :  { %6 = vsyncpa [#allocation3], 0  ;;  %s126_s0 = inlined_call_operand.hbm [shape: f32[8,256], index: 0, kind: input, shape index: {}]   ;;  %s127_s1 = inlined_call_operand.hbm [shape: f32[8,256], index: 1, kind: output, shape index: {}]  }
   0x1   :  { %7 = vsyncpa [#allocation4], 0  ;;  %s90_s6 = smov [#allocation2]   ;;  %s42_s10 = scalar_lea.hbm %s126_s0, 256 }
   0x2   :  { %s14_s7 = sshll.u32 %s90_s6, 4  ;;  %p43_p0 = scmp.ne.s32.totalorder %s126_s0, %s42_s10  ;;  %s15_s7 = int_to_ptr.vmem [resolvable:$true] %s14_s7 }
   0x3   :  { %p46_p1 = scmp.lt.u32.totalorder %s42_s10, %s126_s0 }
   0x5   :  { %p48_p2 = pnand %p46_p1, %p43_p0 }
   0x7   :  { %51 = shalt.err (!%p48_p2)
}
   0x8   :  { %s52_s15 = scalar_lea.vmem %s15_s7, 256  ;;  %p57_p4 = scmp.lt.s32.totalorder %s15_s7, %s15_s7 }
   0x9   :  { %p53_p3 = scmp.ne.s32.totalorder %s15_s7, %s52_s15  ;;  %p58_p5 = scmp.lt.s32.totalorder %s52_s15, %s52_s15 }
   0xb   :  { %p59_p6 = por %p58_p5, %p57_p4 }
   0xd   :  { %p60_p7 = pnand %p59_p6, %p53_p3 }
   0xf   :  { %63 = shalt.err (!%p60_p7)
}
  0x10   :  { %17 = dma.hbm_to_vmem [thread:$0]  %s126_s0, 256, %s15_s7, [#allocation3]  }
  0x11   :  { %86 = dma.done.wait [#allocation3], 256  }
  0x12   :  { %87 = vsyncadd [#allocation3], 4294967040  ;;  %s91_s18 = smov [#allocation5]   ;;  %v21_v0 = vld [vmem:[#allocation2] sm:$0xff]  ;;  %v22_v1 = vld [vmem:[#allocation2 + $0x8] sm:$0xff] }
  0x13   :  { %s31_s19 = sshll.u32 %s91_s18, 4  ;;  %23 = vst [vmem:[#allocation5] sm:$0xff] %v21_v0  ;;  %24 = vst [vmem:[#allocation5 + $0x8] sm:$0xff] %v22_v1  ;;  %s32_s19 = int_to_ptr.vmem [resolvable:$true] %s31_s19 }
  0x14   :  { %s64_s20 = scalar_lea.vmem %s32_s19, 256  ;;  %p69_p9 = scmp.lt.s32.totalorder %s32_s19, %s32_s19 }
  0x15   :  { %p65_p8 = scmp.ne.s32.totalorder %s32_s19, %s64_s20  ;;  %p70_p10 = scmp.lt.s32.totalorder %s64_s20, %s64_s20 }
  0x17   :  { %p71_p11 = por %p70_p10, %p69_p9 }
  0x19   :  { %p72_p12 = pnand %p71_p11, %p65_p8 }
  0x1b   :  { %75 = shalt.err (!%p72_p12)
}
  0x1c   :  { %s76_s0 = scalar_lea.hbm %s127_s1, 256 }
  0x1d   :  { %p77_p13 = scmp.ne.s32.totalorder %s127_s1, %s76_s0  ;;  %p80_p0 = scmp.lt.u32.totalorder %s76_s0, %s127_s1 }
  0x1f   :  { %p82_p1 = pnand %p80_p0, %p77_p13 }
  0x21   :  { %85 = shalt.err (!%p82_p1)
}
  0x22   :  { %34 = dma.vmem_to_hbm [thread:$0]  %s32_s19, 256, %s127_s1, [#allocation4]  }
  0x23   :  { %88 = dma.done.wait [#allocation4], 256  }
  0x24   :  { %89 = vsyncadd [#allocation4], 4294967040 }
  0x25   :  { %38 = vsyncpa [#allocation3], 1 }
  0x26   :  { %39 = vsyncpa [#allocation4], 1 }

</bundles_post_ra>
